<compile_context>
chip_gen: v7x
topology: tpu7x:2x2x1
jax: 0.10.0
libtpu: 0.0.40
codegen_flags: <defaults>
</compile_context>

<pallas_src>
import jax
import jax.numpy as jnp
from jax.experimental import pallas as pl
from jax.experimental.pallas import tpu as pltpu


_SUBLANE = 8
_LANE = 128
_MAX_TILE_ROWS = 16384


def _round_up(n, m):
    return ((n + m - 1) // m) * m


def _vmem_limit_bytes():
    """Generation-aware scoped VMEM limit (~96 MiB on 128-MiB parts, ~48 MiB on v7x)."""
    try:
        cap = int(pltpu.get_tpu_info().vmem_capacity_bytes)
    except Exception:
        cap = 64 * 1024 * 1024
    return int(min(cap * 3 // 4, 96 * 1024 * 1024))


def _pick_batch_tile(batch, feat, hidden, vmem_limit):
    """Largest batch tile whose streaming working set fits the VMEM budget."""
    f_l = _round_up(max(feat, 1), _LANE)
    h_l = _round_up(max(hidden, 1), _LANE)
    # Resident operands (w1 kept double-buffered by the pipeline) + padded bias rows + fudge.
    resident = 2 * feat * hidden * 2 + 6 * _SUBLANE * max(h_l, _LANE) * 4 + (64 << 10)
    budget = int(vmem_limit * 0.6) - resident
    # Per-row: bf16 x tile (double-buffered, lane-padded) + f32 hidden activations
    #          + (tb,1) f32 column buffers (out / targets / weights), double-buffered.
    per_row = 2 * f_l * 2 + h_l * 4 + 3 * 2 * 512 + 64
    tb = max(budget, 0) // per_row
    tb = max(_SUBLANE, min(tb, _MAX_TILE_ROWS))
    tb = (tb // _SUBLANE) * _SUBLANE
    return min(tb, _round_up(batch, _SUBLANE))


# ------------------------- one-time parameter prep --------------------------
def prepare_params(w1, b1, w2, b2, *, matmul_dtype=jnp.bfloat16):
    """Hoisted layout/dtype glue (PyTorch (out_f, in_f) -> kernel (in_f, out_f)). Call once."""
    w1_t = jnp.asarray(w1, jnp.float32).T.astype(matmul_dtype)   # (F, H) MXU operand
    b1_r = jnp.asarray(b1, jnp.float32).reshape(1, -1)           # (1, H) f32
    w2_r = jnp.asarray(w2, jnp.float32).reshape(1, -1)           # (1, H) f32 (VPU operand)
    b2_r = jnp.asarray(b2, jnp.float32).reshape(1, 1)            # (1, 1) f32
    return w1_t, b1_r, w2_r, b2_r


# ----------------------------- kernel bodies --------------------------------
def _mlp_logits(x_ref, w1_ref, b1_ref, w2_ref, b2_ref):
    """Shared body: (TB, F) tile -> logits (TB, 1) f32."""
    w1 = w1_ref[...]                                             # (F, H), VMEM-resident
    x = x_ref[...]                                               # (TB, F), streamed (bf16)
    if x.dtype != w1.dtype:                                      # dead branch on the hot path
        x = x.astype(w1.dtype)
    h = jnp.dot(x, w1, preferred_element_type=jnp.float32)       # MXU, f32 accumulate
    h = jnp.maximum(h + b1_ref[...], 0.0)                        # bias + ReLU (VPU, f32)
    # Single output unit: VPU mul + XLU lane-reduce instead of a 1-column MXU matmul.
    z = jnp.sum(h * w2_ref[...], axis=-1, keepdims=True) + b2_ref[...]
    return z                                                     # (TB, 1) logits


def _fwd_kernel(x_ref, w1_ref, b1_ref, w2_ref, b2_ref, o_ref):
    z = _mlp_logits(x_ref, w1_ref, b1_ref, w2_ref, b2_ref)
    o_ref[...] = jax.nn.sigmoid(z).astype(o_ref.dtype)           # probabilities (TB, 1)


def _loss_kernel(nrows_ref, x_ref, w1_ref, b1_ref, w2_ref, b2_ref, t_ref, wt_ref, part_ref):
    """Per-tile partial of weighted BCE-with-logits; batch axis stays 'parallel'."""
    z = _mlp_logits(x_ref, w1_ref, b1_ref, w2_ref, b2_ref)       # (TB, 1)
    t = t_ref[...]
    # Numerically stable BCE-with-logits (== BCELoss(sigmoid(z), t)):
    #   max(z, 0) - z*t + log(1 + exp(-|z|))
    bce = jnp.maximum(z, 0.0) - z * t + jnp.log(1.0 + jnp.exp(-jnp.abs(z)))
    tb = z.shape[0]
    # Mask tail rows of the last tile (garbage x / t / w beyond the true batch size).
    row = pl.program_id(0) * tb + jax.lax.broadcasted_iota(jnp.int32, (tb, 1), 0)
    valid = row < nrows_ref[0]
    wbce = jnp.where(valid, bce * wt_ref[...], 0.0)
    # Lane-dense per-tile partial: splat the scalar across the (1, 8, 128) block.
    part_ref[...] = jnp.zeros_like(part_ref) + jnp.sum(wbce)


# ------------------------------- wrappers ------------------------------------
def binary_classifier_forward(x, params):
    """x: (B, F); params from prepare_params(). Returns probabilities (B, 1) f32."""
    w1_t, b1_r, w2_r, b2_r = params
    x = jnp.asarray(x, dtype=w1_t.dtype)          # stream bf16: halves HBM bytes on the hot path
    B, F = x.shape
    H = w1_t.shape[1]
    vmem_limit = _vmem_limit_bytes()
    tb = _pick_batch_tile(B, F, H, vmem_limit)

    probs = pl.pallas_call(
        _fwd_kernel,
        out_shape=jax.ShapeDtypeStruct((B, 1), jnp.float32),
        grid_spec=pltpu.PrefetchScalarGridSpec(
            num_scalar_prefetch=0,
            grid=(pl.cdiv(B, tb),),                               # no jnp.pad: OOB writes dropped
            in_specs=[
                pl.BlockSpec((tb, F), lambda i: (i, 0)),          # x: streamed, double-buffered
                pl.BlockSpec((F, H), lambda i: (0, 0)),           # w1: resident
                pl.BlockSpec((1, H), lambda i: (0, 0)),           # b1: resident
                pl.BlockSpec((1, H), lambda i: (0, 0)),           # w2 row: resident
                pl.BlockSpec((1, 1), lambda i: (0, 0)),           # b2: resident
            ],
            out_specs=pl.BlockSpec((tb, 1), lambda i: (i, 0)),
        ),
        compiler_params=pltpu.CompilerParams(
            dimension_semantics=("parallel",),                    # shard batch over 2 TCs on v7x
            vmem_limit_bytes=vmem_limit,
        ),
    )(x, w1_t, b1_r, w2_r, b2_r)
    return probs


def forward_and_weighted_bce_loss(x, targets, weights, params):
    """Fused forward + mean(weight * BCE(sigmoid(z), target)). Returns scalar f32."""
    w1_t, b1_r, w2_r, b2_r = params
    x = jnp.asarray(x, dtype=w1_t.dtype)
    B, F = x.shape
    H = w1_t.shape[1]
    vmem_limit = _vmem_limit_bytes()
    tb = _pick_batch_tile(B, F, H, vmem_limit)
    grid_n = pl.cdiv(B, tb)

    t = jnp.reshape(targets, (B, 1)).astype(jnp.float32)
    w = jnp.reshape(weights, (B, 1)).astype(jnp.float32)
    nrows = jnp.array([B], dtype=jnp.int32)       # SMEM scalar (scalar prefetch): tail-mask bound

    partials = pl.pallas_call(
        _loss_kernel,
        out_shape=jax.ShapeDtypeStruct((grid_n, _SUBLANE, _LANE), jnp.float32),
        grid_spec=pltpu.PrefetchScalarGridSpec(
            num_scalar_prefetch=1,
            grid=(grid_n,),
            in_specs=[
                pl.BlockSpec((tb, F), lambda i, n: (i, 0)),
                pl.BlockSpec((F, H), lambda i, n: (0, 0)),
                pl.BlockSpec((1, H), lambda i, n: (0, 0)),
                pl.BlockSpec((1, H), lambda i, n: (0, 0)),
                pl.BlockSpec((1, 1), lambda i, n: (0, 0)),
                pl.BlockSpec((tb, 1), lambda i, n: (i, 0)),       # targets
                pl.BlockSpec((tb, 1), lambda i, n: (i, 0)),       # per-sample weights
            ],
            out_specs=pl.BlockSpec((1, _SUBLANE, _LANE), lambda i, n: (i, 0, 0)),
        ),
        compiler_params=pltpu.CompilerParams(
            dimension_semantics=("parallel",),                    # per-tile partials -> both TCs
            vmem_limit_bytes=vmem_limit,
        ),
    )(nrows, x, w1_t, b1_r, w2_r, b2_r, t, w)
    return jnp.sum(partials[:, 0, 0]) / jnp.float32(B)


def compute_class_weights(labels):
    # Glue (tiny integer bincount) — mirrors torch.bincount / reciprocal, with a
    # guard so a single-class batch does not produce inf weights.
    counts = jnp.bincount(labels.astype(jnp.int32), length=2)
    counts_f = counts.astype(jnp.float32)
    return jnp.where(counts > 0, 1.0 / jnp.maximum(counts_f, 1.0), 0.0)


# ---------------------------------- main --------------------------------------
if __name__ == "__main__":
    key = jax.random.PRNGKey(0)
    B, F, H = 8, 32, 32

    kx, kw1, kb1, kw2, kb2, ky = jax.random.split(key, 6)
    x = jax.random.normal(kx, (B, F), dtype=jnp.float32)

    # Deterministic parameter init (PyTorch Linear layout: weight (out_f, in_f)).
    w1 = jax.random.normal(kw1, (H, F), dtype=jnp.float32) * 0.1
    b1 = jax.random.normal(kb1, (H,), dtype=jnp.float32) * 0.1
    w2 = jax.random.normal(kw2, (1, H), dtype=jnp.float32) * 0.1
    b2 = jax.random.normal(kb2, (1,), dtype=jnp.float32) * 0.1

    params = prepare_params(w1, b1, w2, b2)   # one-time layout / dtype prep

    def ref_probs(xi):
        h_ref = jnp.maximum(xi @ w1.T + b1, 0.0)
        return jax.nn.sigmoid(h_ref @ w2.T + b2)

    # Forward pass (predict_proba path): probabilities of shape (B, 1).
    probs = jax.block_until_ready(binary_classifier_forward(x, params))
    assert probs.shape == (B, 1)
    assert bool(jnp.all((probs >= 0.0) & (probs <= 1.0)))
    p_ref = ref_probs(x)
    assert bool(jnp.allclose(probs, p_ref, atol=5e-2, rtol=5e-2))

    # Fused weighted BCE loss path (as used in fit()).
    labels = jax.random.bernoulli(ky, 0.5, (B,)).astype(jnp.float32)
    class_w = compute_class_weights(labels)
    batch_w = class_w[labels.astype(jnp.int32)]
    loss = jax.block_until_ready(forward_and_weighted_bce_loss(x, labels, batch_w, params))
    assert bool(jnp.isfinite(loss))

    t_ref = labels.reshape(B, 1)
    bce_ref = -(t_ref * jnp.log(jnp.clip(p_ref, 1e-7, 1.0))
                + (1.0 - t_ref) * jnp.log(jnp.clip(1.0 - p_ref, 1e-7, 1.0)))
    loss_ref = jnp.mean(bce_ref * batch_w.reshape(B, 1))
    assert bool(jnp.allclose(loss, loss_ref, atol=5e-2, rtol=5e-2))

    # Tail-masking path: batch not a multiple of the sublane/tile size (no jnp.pad).
    B2 = 13
    x2 = jax.random.normal(jax.random.PRNGKey(1), (B2, F), dtype=jnp.float32)
    probs2 = jax.block_until_ready(binary_classifier_forward(x2, params))
    assert probs2.shape == (B2, 1)
    assert bool(jnp.allclose(probs2, ref_probs(x2), atol=5e-2, rtol=5e-2))

    labels2 = jax.random.bernoulli(jax.random.PRNGKey(2), 0.5, (B2,)).astype(jnp.float32)
    cw2 = compute_class_weights(labels2)
    bw2 = cw2[labels2.astype(jnp.int32)]
    loss2 = jax.block_until_ready(forward_and_weighted_bce_loss(x2, labels2, bw2, params))
    p2_ref = ref_probs(x2)
    t2 = labels2.reshape(B2, 1)
    bce2_ref = -(t2 * jnp.log(jnp.clip(p2_ref, 1e-7, 1.0))
                 + (1.0 - t2) * jnp.log(jnp.clip(1.0 - p2_ref, 1e-7, 1.0)))
    loss2_ref = jnp.mean(bce2_ref * bw2.reshape(B2, 1))
    assert bool(jnp.isfinite(loss2))
    assert bool(jnp.allclose(loss2, loss2_ref, atol=5e-2, rtol=5e-2))

    # predict() equivalent (glue): threshold at 0.5.
    preds = (probs > 0.5).astype(jnp.int32)
    jax.block_until_ready(preds)

    print("KERNEL_OK")
</pallas_src>

<mosaic_0001>
module attributes {stable_mosaic.version = 11 : i64} {
  func.func @_fwd_kernel(%arg0: i32, %arg1: memref<8x32xbf16, #tpu.memory_space<vmem>>, %arg2: memref<32x32xbf16, #tpu.memory_space<vmem>>, %arg3: memref<1x32xf32, #tpu.memory_space<vmem>>, %arg4: memref<1x32xf32, #tpu.memory_space<vmem>>, %arg5: memref<1x1xf32, #tpu.memory_space<vmem>>, %arg6: memref<8x1xf32, #tpu.memory_space<vmem>>) attributes {dimension_semantics = [#tpu.dimension_semantics<parallel>], iteration_bounds = array<i64: 1>, scalar_prefetch = 0 : i64, scratch_operands = 0 : i64, tpu.core_type = #tpu.core_type<tc>, window_params = [{transform_indices = @transform_0, window_bounds = array<i64: 8, 32>}, {pipeline_mode = #tpu.pipeline_mode<synchronous>, transform_indices = @transform_1, window_bounds = array<i64: 32, 32>}, {pipeline_mode = #tpu.pipeline_mode<synchronous>, transform_indices = @transform_2, window_bounds = array<i64: 1, 32>}, {pipeline_mode = #tpu.pipeline_mode<synchronous>, transform_indices = @transform_3, window_bounds = array<i64: 1, 32>}, {pipeline_mode = #tpu.pipeline_mode<synchronous>, transform_indices = @transform_4, window_bounds = array<i64: 1, 1>}, {transform_indices = @transform_5, window_bounds = array<i64: 8, 1>}]} {
    %c0 = arith.constant 0 : index
    %c0_0 = arith.constant 0 : index
    %0 = vector.load %arg2[%c0, %c0_0] : memref<32x32xbf16, #tpu.memory_space<vmem>>, vector<32x32xbf16>
    %c0_1 = arith.constant 0 : index
    %c0_2 = arith.constant 0 : index
    %1 = vector.load %arg1[%c0_1, %c0_2] : memref<8x32xbf16, #tpu.memory_space<vmem>>, vector<8x32xbf16>
    %cst = arith.constant dense<0.000000e+00> : vector<8x32xf32>
    %2 = tpu.matmul %1, %0, %cst {dimension_numbers = #tpu.dot_dimension_numbers<[1], [0], [0], [1], [0, 0, 1, 1], [], []>} : vector<8x32xbf16>, vector<32x32xbf16>, vector<8x32xf32> -> vector<8x32xf32>
    %c0_3 = arith.constant 0 : index
    %c0_4 = arith.constant 0 : index
    %3 = vector.load %arg3[%c0_3, %c0_4] : memref<1x32xf32, #tpu.memory_space<vmem>>, vector<1x32xf32>
    %4 = vector.broadcast %3 : vector<1x32xf32> to vector<8x32xf32>
    %5 = arith.addf %2, %4 : vector<8x32xf32>
    %cst_5 = arith.constant 0.000000e+00 : f32
    %6 = vector.broadcast %cst_5 : f32 to vector<8x32xf32>
    %7 = arith.maximumf %5, %6 : vector<8x32xf32>
    %c0_6 = arith.constant 0 : index
    %c0_7 = arith.constant 0 : index
    %8 = vector.load %arg4[%c0_6, %c0_7] : memref<1x32xf32, #tpu.memory_space<vmem>>, vector<1x32xf32>
    %9 = vector.broadcast %8 : vector<1x32xf32> to vector<8x32xf32>
    %10 = arith.mulf %7, %9 : vector<8x32xf32>
    %cst_8 = arith.constant dense<0.000000e+00> : vector<8xf32>
    %11 = vector.multi_reduction <add>, %10, %cst_8 [1] : vector<8x32xf32> to vector<8xf32>
    %12 = vector.shape_cast %11 : vector<8xf32> to vector<8x1xf32>
    %c0_9 = arith.constant 0 : index
    %c0_10 = arith.constant 0 : index
    %13 = vector.load %arg5[%c0_9, %c0_10] : memref<1x1xf32, #tpu.memory_space<vmem>>, vector<1x1xf32>
    %14 = vector.broadcast %13 : vector<1x1xf32> to vector<8x1xf32>
    %15 = arith.addf %12, %14 : vector<8x1xf32>
    %16 = arith.negf %15 : vector<8x1xf32>
    %17 = math.exp %16 : vector<8x1xf32>
    %cst_11 = arith.constant 1.000000e+00 : f32
    %18 = vector.broadcast %cst_11 : f32 to vector<8x1xf32>
    %19 = arith.addf %18, %17 : vector<8x1xf32>
    %20 = arith.divf %18, %19 : vector<8x1xf32>
    %c0_12 = arith.constant 0 : index
    %c0_13 = arith.constant 0 : index
    %21 = vector.load %arg6[%c0_12, %c0_13] : memref<8x1xf32, #tpu.memory_space<vmem>>, vector<8x1xf32>
    tpu.vector_store %arg6[%c0_12, %c0_13], %20 {strides = array<i32>} : memref<8x1xf32, #tpu.memory_space<vmem>>, vector<8x1xf32>,
    return
  }
  func.func @transform_0(%arg0: i32) -> (i32, i32) {
    %c0_i32 = arith.constant 0 : i32
    %c0_i32_0 = arith.constant 0 : i32
    return %arg0, %c0_i32 : i32, i32
  }
  func.func @transform_1(%arg0: i32) -> (i32, i32) {
    %c0_i32 = arith.constant 0 : i32
    %c0_i32_0 = arith.constant 0 : i32
    %c0_i32_1 = arith.constant 0 : i32
    return %c0_i32, %c0_i32_0 : i32, i32
  }
  func.func @transform_2(%arg0: i32) -> (i32, i32) {
    %c0_i32 = arith.constant 0 : i32
    %c0_i32_0 = arith.constant 0 : i32
    %c0_i32_1 = arith.constant 0 : i32
    return %c0_i32, %c0_i32_0 : i32, i32
  }
  func.func @transform_3(%arg0: i32) -> (i32, i32) {
    %c0_i32 = arith.constant 0 : i32
    %c0_i32_0 = arith.constant 0 : i32
    %c0_i32_1 = arith.constant 0 : i32
    return %c0_i32, %c0_i32_0 : i32, i32
  }
  func.func @transform_4(%arg0: i32) -> (i32, i32) {
    %c0_i32 = arith.constant 0 : i32
    %c0_i32_0 = arith.constant 0 : i32
    %c0_i32_1 = arith.constant 0 : i32
    return %c0_i32, %c0_i32_0 : i32, i32
  }
  func.func @transform_5(%arg0: i32) -> (i32, i32) {
    %c0_i32 = arith.constant 0 : i32
    %c0_i32_0 = arith.constant 0 : i32
    return %arg0, %c0_i32 : i32, i32
  }
}

</mosaic_0001>

<bundles_post_ra>
// kernel: tpu_custom_call.1
= control target key start
LH: loop header
LB: loop body
LE: loop exit
PB: predicated region body
PF: predicated region fallthrough
CT: control target
= control target key end

     0   :  { %s308_s0 = inlined_call_operand.hbm [shape: bf16[8,32], index: 0, kind: input, shape index: {}]   ;;  %s309_s1 = inlined_call_operand.hbm [shape: bf16[32,32], index: 1, kind: input, shape index: {}]   ;;  %s310_s2 = inlined_call_operand.vmem [shape: f32[1,32], index: 2, kind: input, shape index: {}]   ;;  %s311_s3 = inlined_call_operand.vmem [shape: f32[1,32], index: 3, kind: input, shape index: {}]   ;;  %s312_s4 = inlined_call_operand.<no memory space> [shape: f32[1,1], index: 4, kind: input, shape index: {}]   ;;  %s313_s5 = inlined_call_operand.vmem [shape: f32[8,1], index: 5, kind: output, shape index: {}]  }
   0x1   :  { %v10_v0 = vstv %s312_s4 }
   0x2   :  { %11 = vst [vmem:[#allocation2] sm:$0x1] %v10_v0 }
   0x3   :  { %12 = vsyncpa [#allocation4], 0 }
   0x4   :  { %13 = vsyncpa [#allocation6], 0  ;;  %s229_s20 = smov [#allocation3]   ;;  %s230_s22 = smov [#allocation5]  }
   0x5   :  { %s20_s21 = sshll.u32 %s229_s20, 4  ;;  %s29_s23 = sshll.u32 %s230_s22, 4  ;;  %s21_s21 = int_to_ptr.vmem [resolvable:$true] %s20_s21  ;;  %s268_s23 = int_to_ptr.vmem [resolvable:$true] %s29_s23 }
   0x6   :  { %s181_s26 = scalar_lea.hbm %s308_s0, 64 }
   0x7   :  { %p182_p0 = scmp.ne.s32.totalorder %s308_s0, %s181_s26  ;;  %p185_p1 = scmp.lt.u32.totalorder %s181_s26, %s308_s0 }
   0x9   :  { %p187_p2 = pnand %p185_p1, %p182_p0 }
   0xb   :  { %190 = shalt.err (!%p187_p2)
}
   0xc   :  { %s191_s30 = scalar_lea.vmem %s21_s21, 64  ;;  %p196_p4 = scmp.lt.s32.totalorder %s21_s21, %s21_s21 }
   0xd   :  { %p192_p3 = scmp.ne.s32.totalorder %s21_s21, %s191_s30  ;;  %p197_p5 = scmp.lt.s32.totalorder %s191_s30, %s191_s30 }
   0xf   :  { %p198_p6 = por %p197_p5, %p196_p4 }
  0x11   :  { %p199_p7 = pnand %p198_p6, %p192_p3 }
  0x13   :  { %202 = shalt.err (!%p199_p7)
}
  0x14   :  { %23 = dma.hbm_to_vmem [thread:$0]  %s308_s0, 64, %s21_s21, [#allocation4]  }
  0x15   :  { %s203_s10 = scalar_lea.hbm %s309_s1, 256 }
  0x16   :  { %p204_p8 = scmp.ne.s32.totalorder %s309_s1, %s203_s10  ;;  %p207_p9 = scmp.lt.u32.totalorder %s203_s10, %s309_s1 }
  0x18   :  { %p209_p10 = pnand %p207_p9, %p204_p8 }
  0x1a   :  { %212 = shalt.err (!%p209_p10)
}
  0x1b   :  { %s213_s15 = scalar_lea.vmem %s268_s23, 256  ;;  %p218_p12 = scmp.lt.s32.totalorder %s268_s23, %s268_s23 }
  0x1c   :  { %p214_p11 = scmp.ne.s32.totalorder %s268_s23, %s213_s15  ;;  %p219_p13 = scmp.lt.s32.totalorder %s213_s15, %s213_s15 }
  0x1e   :  { %p220_p0 = por %p219_p13, %p218_p12 }
  0x20   :  { %p221_p1 = pnand %p220_p0, %p214_p11 }
  0x22   :  { %224 = shalt.err (!%p221_p1)
}
  0x23   :  { %s231_s0 = smov 64   ;;  %s232_s16 = smov 4  }
  0x24   :  { %35 = dma.hbm_to_vmem [thread:$0]  %s309_s1, 256, %s268_s23, [#allocation6], %s231_s0, %s231_s0, %s232_s16  }
  0x25   :  { %225 = dma.done.wait [#allocation4], 64  }
  0x26   :  { %226 = vsyncadd [#allocation4], 4294967232 }
  0x27   :  { %227 = dma.done.wait [#allocation6], 256  }
  0x28   :  { %228 = vsyncadd [#allocation6], 4294967040  ;;  %v233_v1 = vmov 0.0   ;;  %vm234_vm0 = vmmov 0   ;;  %v175_v2 = vld [vmem:[#allocation5] sm:$0xff]   ;;  %v176_v3 = vld [vmem:[#allocation5 + $0x8] sm:$0xff]  }
  0x29   :  { %161 = vmatprep.subr.bf16.mxu0 %v233_v1  ;;  %165 = vmatprep.mubr.msk.bf16.mxu0 %vm234_vm0, %v233_v1  ;;  %v53_v4 = vld [vmem:[#allocation3] sm:$0xf]  ;;  %vm73_vm1 = vcmask 261120   ;;  %v151_v5 = vld [vmem:[%s310_s2] ss:$0 sm:$0xff]  ;;  %vm143_vm2 = vcmask 7168  }
  0x2a   :  { %162 = vmatpush3.bf16.msra.mxu0 %v175_v2  ;;  %v155_v10 = vld [vmem:[%s311_s3] ss:$0 sm:$0xff] }
  0x2b   :  { %163 = vmatprep.subr.bf16.mxu0 %v233_v1  ;;  %v156_v15 = vld [vmem:[#allocation2] ss:$0 sm:$0xff] }
  0x2e   :  { %164 = vmatpush3.bf16.msra.mxu0 %v176_v3 }
  0x31   :  { %166 = vmatmul.mubr.msk.bf16.vlgmr.msra.gmra.mrb[0].mxu0 %vm73_vm1, %v53_v4 }
 0x104   :  { %v111_v6 = vpop.f32.mrb[0].mxu0 }
 0x105   :  { %v112_v7 = vadd.f32 %v151_v5, %v111_v6  ;;  %v167_v8 = vpop.f32.mrb[1].mxu0 }
 0x106   :  { %v114_v9 = vpop.f32.mrb[2].mxu0 }
 0x107   :  { %v117_v11 = vmax.f32 %v112_v7, 0.0  ;;  %v168_v12 = vpop.f32.mrb[3].mxu0 }
 0x109   :  { %v125_v13 = vmul.f32 %v155_v10, %v117_v11 }
 0x10b   :  { %v126_v14 = vsel %vm73_vm1, %v125_v13, 0.0 }
 0x10c   :  { %127 = vadd.xlane.f32.xlu0 %v126_v14 }
 0x199   :  { %v128_v16 = vpop.xlane.xlu0 %127 }
 0x19a   :  { %v136_v17 = vadd.f32 %v156_v15, %v128_v16 }
 0x19c   :  { %v157_v18 = vmul.f32 -1.442695, %v136_v17 }
 0x19e   :  { %177 = vpow2.f32 %v157_v18 }
 0x1a8   :  { %v178_v19 = vpop.eup %177 }
 0x1a9   :  { %v140_v20 = vadd.f32 1.0, %v178_v19 }
 0x1ab   :  { %179 = vrcp.f32 %v140_v20 }
 0x1b5   :  { %v180_v21 = vpop.eup %179 }
 0x1b6   :  { %144 = vst.msk [vmem:[%s313_s5] sm:$0xff] %vm143_vm2, %v180_v21 }
 0x1b7   :  { %149 = vsyncpa [#allocation4], 1 }
 0x1b8   :  { %150 = vsyncpa [#allocation6], 1 }

</bundles_post_ra>
